<compile_context>
chip_gen: v5e
topology: v5e:2x2
jax: 0.10.0
libtpu: 0.0.40
codegen_flags: <defaults>
</compile_context>

<pallas_src>
import jax
import jax.numpy as jnp
import numpy as np
from jax import lax
from jax.experimental import pallas as pl
from jax.experimental.pallas import tpu as pltpu

_BN_EPS = 1e-5


def _gcn3_kernel(a_ref, x_ref,
                 w1_ref, b1_ref, s1_ref, t1_ref,
                 w2_ref, b2_ref, s2_ref, t2_ref,
                 w3_ref, b3_ref, s3_ref, t3_ref,
                 wl_ref, bl_ref,
                 out_ref):
    """Fused GCN3 forward: 3 x (GCNConv -> ReLU -> folded BatchNorm) -> Linear."""
    a_hat = a_ref[...]                                     # (N, N) normalized adjacency

    def gcn_layer(h, w_ref, b_ref, s_ref, t_ref):
        # GCNConv: feature transform, neighbourhood aggregation, bias.
        hw = jnp.dot(h, w_ref[...], preferred_element_type=jnp.float32)   # (N, H) MXU
        h = jnp.dot(a_hat, hw, preferred_element_type=jnp.float32)        # (N, H) MXU
        h = h + b_ref[...]                                  # (1, H) sublane-broadcast
        h = jnp.maximum(h, 0.0)                             # ReLU (VPU)
        return h * s_ref[...] + t_ref[...]                  # BatchNorm folded to fma

    h = x_ref[...]
    h = gcn_layer(h, w1_ref, b1_ref, s1_ref, t1_ref)
    h = gcn_layer(h, w2_ref, b2_ref, s2_ref, t2_ref)
    h = gcn_layer(h, w3_ref, b3_ref, s3_ref, t3_ref)

    # Linear head on the VPU/XLU: with num_classes ~ 1-2 an MXU matmul would use
    # <1% of the systolic array and add push/pop latency to the critical path.
    # Weight rows are lane-dense (C, H); each class = broadcast-mul + lane reduce.
    num_classes = wl_ref.shape[0]
    bias_row = bl_ref[...]                                  # (1, C)
    for c in range(num_classes):                            # tiny, static unroll
        w_row = wl_ref[pl.ds(c, 1), :]                      # (1, H) lane-dense row
        col = jnp.sum(h * w_row, axis=-1, keepdims=True)    # (N, 1)  VPU + XLU reduce
        out_ref[:, pl.ds(c, 1)] = (col + bias_row[:, c:c + 1]).astype(out_ref.dtype)


def _gcn_normalized_adjacency(edge_index, edge_weight, num_nodes, dtype):
    """Dense A_hat = D^-1/2 (A + I) D^-1/2, matching PyG gcn_norm (add_self_loops)."""
    # TODO(synk): the edge_index scatter / sparse GCN aggregation has no clean
    # Pallas-TPU equivalent; it is materialised densely here with XLA ops and
    # the kernel consumes the dense normalized adjacency.
    src = edge_index[0]
    dst = edge_index[1]
    if edge_weight is None:
        edge_weight = jnp.ones((edge_index.shape[1],), dtype)
    loops = jnp.arange(num_nodes, dtype=src.dtype)
    src = jnp.concatenate([src, loops])
    dst = jnp.concatenate([dst, loops])
    w = jnp.concatenate([edge_weight.astype(dtype), jnp.ones((num_nodes,), dtype)])
    deg = jnp.zeros((num_nodes,), dtype).at[dst].add(w)
    dinv = jnp.where(deg > 0, lax.rsqrt(deg), 0.0)
    norm = dinv[src] * w * dinv[dst]
    return jnp.zeros((num_nodes, num_nodes), dtype).at[dst, src].add(norm)


def gcn3_forward(x, edge_index, params, edge_weight=None):
    """GCN3 forward pass (logits), fused into a single Pallas TPU kernel."""
    num_nodes = x.shape[0]
    a_hat = _gcn_normalized_adjacency(edge_index, edge_weight, num_nodes, x.dtype)

    kernel_args = [a_hat, x]
    for layer in params["convs"]:
        # Fold inference-mode BatchNorm into per-channel scale/shift in the
        # wrapper (XLA fuses this for free; keeps kernel operands to 2 rows).
        scale = layer["bn_gamma"] * lax.rsqrt(layer["bn_var"] + _BN_EPS)
        shift = layer["bn_beta"] - layer["bn_mean"] * scale
        kernel_args += [layer["w"], layer["b"][None, :], scale[None, :], shift[None, :]]
    kernel_args += [params["lin_w"], params["lin_b"][None, :]]

    num_classes = params["lin_w"].shape[0]
    return pl.pallas_call(
        _gcn3_kernel,
        # Grid-free: the whole (small) problem is one VMEM-resident step
        # ("drop the grid entirely for small N"); inputs/outputs default to
        # whole-array VMEM blocks.
        out_shape=jax.ShapeDtypeStruct((num_nodes, num_classes), x.dtype),
        compiler_params=pltpu.CompilerParams(
            # Tiny footprint (<1 MiB); stays well under the default scoped
            # VMEM limit on every generation (incl. v7x's 32 MiB default).
            vmem_limit_bytes=32 * 1024 * 1024,
        ),
    )(*kernel_args)


def _init_params(key, num_features, hidden_size, num_classes):
    def linear_init(k, fan_in, shape):
        bound = 1.0 / float(np.sqrt(fan_in))
        return jax.random.uniform(k, shape, jnp.float32, -bound, bound)

    keys = jax.random.split(key, 4)
    convs = []
    in_dim = num_features
    for i in range(3):
        kw, kb, kg, kbeta, km, kv = jax.random.split(keys[i], 6)
        convs.append(dict(
            w=linear_init(kw, in_dim, (in_dim, hidden_size)),
            b=linear_init(kb, in_dim, (hidden_size,)),
            bn_gamma=jax.random.uniform(kg, (hidden_size,), jnp.float32, 0.5, 1.5),
            bn_beta=0.1 * jax.random.normal(kbeta, (hidden_size,), jnp.float32),
            bn_mean=0.1 * jax.random.normal(km, (hidden_size,), jnp.float32),
            bn_var=jax.random.uniform(kv, (hidden_size,), jnp.float32, 0.5, 1.5),
        ))
        in_dim = hidden_size
    kw, kb = jax.random.split(keys[3], 2)
    return dict(
        convs=convs,
        # PyTorch Linear layout (num_classes, hidden): lane-dense rows.
        lin_w=linear_init(kw, hidden_size, (num_classes, hidden_size)),
        lin_b=linear_init(kb, hidden_size, (num_classes,)),
    )


if __name__ == "__main__":
    num_nodes = 24
    num_features = 16
    hidden_size = 32          # == embedding_size in GCN3
    num_classes = 2
    num_edges = 48

    key = jax.random.PRNGKey(0)
    kx, ke, kp = jax.random.split(key, 3)

    x = jax.random.normal(kx, (num_nodes, num_features), jnp.float32)
    # Random undirected edge set (duplicates fine; scatter-add handles them).
    half = jax.random.randint(ke, (2, num_edges), 0, num_nodes, jnp.int32)
    edge_index = jnp.concatenate([half, half[::-1]], axis=1)

    params = _init_params(kp, num_features, hidden_size, num_classes)

    logits = gcn3_forward(x, edge_index, params)   # edge_weights=None -> ones
    logits = jax.block_until_ready(logits)
    assert logits.shape == (num_nodes, num_classes)

    # float64 host reference (same dense A_hat the kernel consumes).
    a_hat = np.asarray(
        _gcn_normalized_adjacency(edge_index, None, num_nodes, jnp.float32),
        np.float64)
    h = np.asarray(x, np.float64)
    for layer in params["convs"]:
        w = np.asarray(layer["w"], np.float64)
        b = np.asarray(layer["b"], np.float64)
        gamma = np.asarray(layer["bn_gamma"], np.float64)
        beta = np.asarray(layer["bn_beta"], np.float64)
        mean = np.asarray(layer["bn_mean"], np.float64)
        var = np.asarray(layer["bn_var"], np.float64)
        h = a_hat @ (h @ w) + b
        h = np.maximum(h, 0.0)
        h = (h - mean) / np.sqrt(var + _BN_EPS) * gamma + beta
    ref = h @ np.asarray(params["lin_w"], np.float64).T \
        + np.asarray(params["lin_b"], np.float64)

    np.testing.assert_allclose(np.asarray(logits), ref, rtol=2e-2, atol=2e-2)
    print("KERNEL_OK")
</pallas_src>

<mosaic_0001>
module attributes {stable_mosaic.version = 11 : i64} {
  func.func @_gcn3_kernel(%arg0: memref<24x24xf32, #tpu.memory_space<vmem>>, %arg1: memref<24x16xf32, #tpu.memory_space<vmem>>, %arg2: memref<16x32xf32, #tpu.memory_space<vmem>>, %arg3: memref<1x32xf32, #tpu.memory_space<vmem>>, %arg4: memref<1x32xf32, #tpu.memory_space<vmem>>, %arg5: memref<1x32xf32, #tpu.memory_space<vmem>>, %arg6: memref<32x32xf32, #tpu.memory_space<vmem>>, %arg7: memref<1x32xf32, #tpu.memory_space<vmem>>, %arg8: memref<1x32xf32, #tpu.memory_space<vmem>>, %arg9: memref<1x32xf32, #tpu.memory_space<vmem>>, %arg10: memref<32x32xf32, #tpu.memory_space<vmem>>, %arg11: memref<1x32xf32, #tpu.memory_space<vmem>>, %arg12: memref<1x32xf32, #tpu.memory_space<vmem>>, %arg13: memref<1x32xf32, #tpu.memory_space<vmem>>, %arg14: memref<2x32xf32, #tpu.memory_space<vmem>>, %arg15: memref<1x2xf32, #tpu.memory_space<vmem>>, %arg16: memref<24x2xf32, #tpu.memory_space<vmem>>) attributes {dimension_semantics = [], scalar_prefetch = 0 : i64, scratch_operands = 0 : i64, tpu.core_type = #tpu.core_type<tc>} {
    %c0 = arith.constant 0 : index
    %c0_0 = arith.constant 0 : index
    %0 = vector.load %arg0[%c0, %c0_0] : memref<24x24xf32, #tpu.memory_space<vmem>>, vector<24x24xf32>
    %c0_1 = arith.constant 0 : index
    %c0_2 = arith.constant 0 : index
    %1 = vector.load %arg1[%c0_1, %c0_2] : memref<24x16xf32, #tpu.memory_space<vmem>>, vector<24x16xf32>
    %c0_3 = arith.constant 0 : index
    %c0_4 = arith.constant 0 : index
    %2 = vector.load %arg2[%c0_3, %c0_4] : memref<16x32xf32, #tpu.memory_space<vmem>>, vector<16x32xf32>
    %cst = arith.constant dense<0.000000e+00> : vector<24x32xf32>
    %3 = tpu.matmul %1, %2, %cst {dimension_numbers = #tpu.dot_dimension_numbers<[1], [0], [0], [1], [0, 0, 1, 1], [], []>} : vector<24x16xf32>, vector<16x32xf32>, vector<24x32xf32> -> vector<24x32xf32>
    %cst_5 = arith.constant dense<0.000000e+00> : vector<24x32xf32>
    %4 = tpu.matmul %0, %3, %cst_5 {dimension_numbers = #tpu.dot_dimension_numbers<[1], [0], [0], [1], [0, 0, 1, 1], [], []>} : vector<24x24xf32>, vector<24x32xf32>, vector<24x32xf32> -> vector<24x32xf32>
    %c0_6 = arith.constant 0 : index
    %c0_7 = arith.constant 0 : index
    %5 = vector.load %arg3[%c0_6, %c0_7] : memref<1x32xf32, #tpu.memory_space<vmem>>, vector<1x32xf32>
    %6 = vector.broadcast %5 : vector<1x32xf32> to vector<24x32xf32>
    %7 = arith.addf %4, %6 : vector<24x32xf32>
    %cst_8 = arith.constant 0.000000e+00 : f32
    %8 = vector.broadcast %cst_8 : f32 to vector<24x32xf32>
    %9 = arith.maximumf %7, %8 : vector<24x32xf32>
    %c0_9 = arith.constant 0 : index
    %c0_10 = arith.constant 0 : index
    %10 = vector.load %arg4[%c0_9, %c0_10] : memref<1x32xf32, #tpu.memory_space<vmem>>, vector<1x32xf32>
    %11 = vector.broadcast %10 : vector<1x32xf32> to vector<24x32xf32>
    %12 = arith.mulf %9, %11 : vector<24x32xf32>
    %c0_11 = arith.constant 0 : index
    %c0_12 = arith.constant 0 : index
    %13 = vector.load %arg5[%c0_11, %c0_12] : memref<1x32xf32, #tpu.memory_space<vmem>>, vector<1x32xf32>
    %14 = vector.broadcast %13 : vector<1x32xf32> to vector<24x32xf32>
    %15 = arith.addf %12, %14 : vector<24x32xf32>
    %c0_13 = arith.constant 0 : index
    %c0_14 = arith.constant 0 : index
    %16 = vector.load %arg6[%c0_13, %c0_14] : memref<32x32xf32, #tpu.memory_space<vmem>>, vector<32x32xf32>
    %cst_15 = arith.constant dense<0.000000e+00> : vector<24x32xf32>
    %17 = tpu.matmul %15, %16, %cst_15 {dimension_numbers = #tpu.dot_dimension_numbers<[1], [0], [0], [1], [0, 0, 1, 1], [], []>} : vector<24x32xf32>, vector<32x32xf32>, vector<24x32xf32> -> vector<24x32xf32>
    %cst_16 = arith.constant dense<0.000000e+00> : vector<24x32xf32>
    %18 = tpu.matmul %0, %17, %cst_16 {dimension_numbers = #tpu.dot_dimension_numbers<[1], [0], [0], [1], [0, 0, 1, 1], [], []>} : vector<24x24xf32>, vector<24x32xf32>, vector<24x32xf32> -> vector<24x32xf32>
    %c0_17 = arith.constant 0 : index
    %c0_18 = arith.constant 0 : index
    %19 = vector.load %arg7[%c0_17, %c0_18] : memref<1x32xf32, #tpu.memory_space<vmem>>, vector<1x32xf32>
    %20 = vector.broadcast %19 : vector<1x32xf32> to vector<24x32xf32>
    %21 = arith.addf %18, %20 : vector<24x32xf32>
    %cst_19 = arith.constant 0.000000e+00 : f32
    %22 = vector.broadcast %cst_19 : f32 to vector<24x32xf32>
    %23 = arith.maximumf %21, %22 : vector<24x32xf32>
    %c0_20 = arith.constant 0 : index
    %c0_21 = arith.constant 0 : index
    %24 = vector.load %arg8[%c0_20, %c0_21] : memref<1x32xf32, #tpu.memory_space<vmem>>, vector<1x32xf32>
    %25 = vector.broadcast %24 : vector<1x32xf32> to vector<24x32xf32>
    %26 = arith.mulf %23, %25 : vector<24x32xf32>
    %c0_22 = arith.constant 0 : index
    %c0_23 = arith.constant 0 : index
    %27 = vector.load %arg9[%c0_22, %c0_23] : memref<1x32xf32, #tpu.memory_space<vmem>>, vector<1x32xf32>
    %28 = vector.broadcast %27 : vector<1x32xf32> to vector<24x32xf32>
    %29 = arith.addf %26, %28 : vector<24x32xf32>
    %c0_24 = arith.constant 0 : index
    %c0_25 = arith.constant 0 : index
    %30 = vector.load %arg10[%c0_24, %c0_25] : memref<32x32xf32, #tpu.memory_space<vmem>>, vector<32x32xf32>
    %cst_26 = arith.constant dense<0.000000e+00> : vector<24x32xf32>
    %31 = tpu.matmul %29, %30, %cst_26 {dimension_numbers = #tpu.dot_dimension_numbers<[1], [0], [0], [1], [0, 0, 1, 1], [], []>} : vector<24x32xf32>, vector<32x32xf32>, vector<24x32xf32> -> vector<24x32xf32>
    %cst_27 = arith.constant dense<0.000000e+00> : vector<24x32xf32>
    %32 = tpu.matmul %0, %31, %cst_27 {dimension_numbers = #tpu.dot_dimension_numbers<[1], [0], [0], [1], [0, 0, 1, 1], [], []>} : vector<24x24xf32>, vector<24x32xf32>, vector<24x32xf32> -> vector<24x32xf32>
    %c0_28 = arith.constant 0 : index
    %c0_29 = arith.constant 0 : index
    %33 = vector.load %arg11[%c0_28, %c0_29] : memref<1x32xf32, #tpu.memory_space<vmem>>, vector<1x32xf32>
    %34 = vector.broadcast %33 : vector<1x32xf32> to vector<24x32xf32>
    %35 = arith.addf %32, %34 : vector<24x32xf32>
    %cst_30 = arith.constant 0.000000e+00 : f32
    %36 = vector.broadcast %cst_30 : f32 to vector<24x32xf32>
    %37 = arith.maximumf %35, %36 : vector<24x32xf32>
    %c0_31 = arith.constant 0 : index
    %c0_32 = arith.constant 0 : index
    %38 = vector.load %arg12[%c0_31, %c0_32] : memref<1x32xf32, #tpu.memory_space<vmem>>, vector<1x32xf32>
    %39 = vector.broadcast %38 : vector<1x32xf32> to vector<24x32xf32>
    %40 = arith.mulf %37, %39 : vector<24x32xf32>
    %c0_33 = arith.constant 0 : index
    %c0_34 = arith.constant 0 : index
    %41 = vector.load %arg13[%c0_33, %c0_34] : memref<1x32xf32, #tpu.memory_space<vmem>>, vector<1x32xf32>
    %42 = vector.broadcast %41 : vector<1x32xf32> to vector<24x32xf32>
    %43 = arith.addf %40, %42 : vector<24x32xf32>
    %c0_35 = arith.constant 0 : index
    %c0_36 = arith.constant 0 : index
    %44 = vector.load %arg15[%c0_35, %c0_36] : memref<1x2xf32, #tpu.memory_space<vmem>>, vector<1x2xf32>
    %c0_37 = arith.constant 0 : index
    %c0_38 = arith.constant 0 : index
    %45 = vector.load %arg14[%c0_37, %c0_38] : memref<2x32xf32, #tpu.memory_space<vmem>>, vector<1x32xf32>
    %46 = vector.broadcast %45 : vector<1x32xf32> to vector<24x32xf32>
    %47 = arith.mulf %43, %46 : vector<24x32xf32>
    %cst_39 = arith.constant dense<0.000000e+00> : vector<24xf32>
    %48 = vector.multi_reduction <add>, %47, %cst_39 [1] : vector<24x32xf32> to vector<24xf32>
    %49 = vector.shape_cast %48 : vector<24xf32> to vector<24x1xf32>
    %50 = vector.extract_strided_slice %44 {offsets = [0, 0], sizes = [1, 1], strides = [1, 1]} : vector<1x2xf32> to vector<1x1xf32>
    %51 = vector.broadcast %50 : vector<1x1xf32> to vector<24x1xf32>
    %52 = arith.addf %49, %51 : vector<24x1xf32>
    %c0_40 = arith.constant 0 : index
    %c0_41 = arith.constant 0 : index
    %53 = vector.load %arg16[%c0_40, %c0_41] : memref<24x2xf32, #tpu.memory_space<vmem>>, vector<24x1xf32>
    tpu.vector_store %arg16[%c0_40, %c0_41], %52 {strides = array<i32>} : memref<24x2xf32, #tpu.memory_space<vmem>>, vector<24x1xf32>,
    %c1 = arith.constant 1 : index
    %c0_42 = arith.constant 0 : index
    %54 = vector.load %arg14[%c1, %c0_42] : memref<2x32xf32, #tpu.memory_space<vmem>>, vector<1x32xf32>
    %55 = vector.broadcast %54 : vector<1x32xf32> to vector<24x32xf32>
    %56 = arith.mulf %43, %55 : vector<24x32xf32>
    %cst_43 = arith.constant dense<0.000000e+00> : vector<24xf32>
    %57 = vector.multi_reduction <add>, %56, %cst_43 [1] : vector<24x32xf32> to vector<24xf32>
    %58 = vector.shape_cast %57 : vector<24xf32> to vector<24x1xf32>
    %59 = vector.extract_strided_slice %44 {offsets = [0, 1], sizes = [1, 1], strides = [1, 1]} : vector<1x2xf32> to vector<1x1xf32>
    %60 = vector.broadcast %59 : vector<1x1xf32> to vector<24x1xf32>
    %61 = arith.addf %58, %60 : vector<24x1xf32>
    %c0_44 = arith.constant 0 : index
    %c1_45 = arith.constant 1 : index
    %62 = vector.load %arg16[%c0_44, %c1_45] : memref<24x2xf32, #tpu.memory_space<vmem>>, vector<24x1xf32>
    tpu.vector_store %arg16[%c0_44, %c1_45], %61 {strides = array<i32>} : memref<24x2xf32, #tpu.memory_space<vmem>>, vector<24x1xf32>,
    return
  }
}

</mosaic_0001>

<bundles_post_ra>
// kernel: tpu_custom_call.1
= control target key start
LH: loop header
LB: loop body
LE: loop exit
PB: predicated region body
PF: predicated region fallthrough
CT: control target
= control target key end

     0   :  { %s755_s0 = inlined_call_operand.hbm [shape: f32[24,24], index: 0, kind: input, shape index: {}]   ;;  %s756_s1 = inlined_call_operand.vmem [shape: f32[24,16], index: 1, kind: input, shape index: {}]   ;;  %s757_s2 = inlined_call_operand.hbm [shape: f32[16,32], index: 2, kind: input, shape index: {}]   ;;  %s758_s3 = inlined_call_operand.vmem [shape: f32[1,32], index: 3, kind: input, shape index: {}]   ;;  %s759_s4 = inlined_call_operand.vmem [shape: f32[1,32], index: 4, kind: input, shape index: {}]   ;;  %s760_s5 = inlined_call_operand.vmem [shape: f32[1,32], index: 5, kind: input, shape index: {}]   ;;  %s761_s6 = inlined_call_operand.vmem [shape: f32[32,32], index: 6, kind: input, shape index: {}]   ;;  %s762_s7 = inlined_call_operand.vmem [shape: f32[1,32], index: 7, kind: input, shape index: {}]   ;;  %s763_s8 = inlined_call_operand.vmem [shape: f32[1,32], index: 8, kind: input, shape index: {}]   ;;  %s764_s9 = inlined_call_operand.vmem [shape: f32[1,32], index: 9, kind: input, shape index: {}]   ;;  %s765_s10 = inlined_call_operand.hbm [shape: f32[32,32], index: 10, kind: input, shape index: {}]   ;;  %s766_s11 = inlined_call_operand.vmem [shape: f32[1,32], index: 11, kind: input, shape index: {}]   ;;  %s767_s12 = inlined_call_operand.vmem [shape: f32[1,32], index: 12, kind: input, shape index: {}]   ;;  %s768_s13 = inlined_call_operand.vmem [shape: f32[1,32], index: 13, kind: input, shape index: {}]   ;;  %s769_s14 = inlined_call_operand.vmem [shape: f32[2,32], index: 14, kind: input, shape index: {}]   ;;  %s770_s15 = inlined_call_operand.vmem [shape: f32[1,2], index: 15, kind: input, shape index: {}]   ;;  %s771_s16 = inlined_call_operand.vmem [shape: f32[24,2], index: 16, kind: output, shape index: {}]  }
   0x1   :  { %773 = sst [smem:[#allocation9_spill]] %s755_s0 }
   0x2   :  { %774 = sst [smem:[#allocation10_spill]] %s771_s16 }
   0x3   :  { %21 = vsyncpa [#allocation3], 0 }
   0x4   :  { %22 = vsyncpa [#allocation5], 0  ;;  %s42_s23 = sshll.u32 %s757_s2, 4  ;;  %s545_s24 = smov [#allocation4]   ;;  %s43_s23 = int_to_ptr.hbm [resolvable:$true] %s42_s23 }
   0x5   :  { %s44_s25 = sshll.u32 %s545_s24, 4  ;;  %s775_s28 = sld [smem:[#allocation9_spill]]  ;;  %s45_s25 = int_to_ptr.vmem [resolvable:$true] %s44_s25 }
   0x6   :  { %s546_s30 = smov 128   ;;  %s547_s0 = smov 8  }
   0x7   :  { %50 = dma.hbm_to_vmem [thread:$0]  %s43_s23, 256, %s45_s25, [#allocation5], %s546_s30, %s546_s30, %s547_s0  }
   0x8   :  { %s548_s17 = smov [#allocation2]   ;;  %s69_s16 = sshll.u32 %s765_s10, 4  ;;  %s70_s16 = int_to_ptr.hbm [resolvable:$true] %s69_s16 }
   0x9   :  { %s29_s18 = sshll.u32 %s548_s17, 4  ;;  %s549_s2 = smov [#allocation6]   ;;  %s30_s18 = int_to_ptr.vmem [resolvable:$true] %s29_s18 }
   0xa   :  { %s71_s21 = sshll.u32 %s549_s2, 4  ;;  %s72_s21 = int_to_ptr.vmem [resolvable:$true] %s71_s21 }
   0xb   :  { %s27_s29 = sshll.u32 %s775_s28, 4  ;;  %s28_s29 = int_to_ptr.hbm [resolvable:$true] %s27_s29 }
   0xc   :  { %35 = dma.hbm_to_vmem [thread:$0]  %s28_s29, 384, %s30_s18, [#allocation3], %s546_s30, %s546_s30, %s547_s0  }
   0xd   :  { %77 = dma.hbm_to_vmem [thread:$0]  %s70_s16, 512, %s72_s21, [#allocation5], %s546_s30, %s546_s30, %s547_s0  }
   0xe   :  { %541 = dma.done.wait [#allocation3], 384  }
   0xf   :  { %542 = vsyncadd [#allocation3], 4294966912 }
  0x10   :  { %543 = dma.done.wait [#allocation5], 768  }
  0x11   :  { %544 = vsyncadd [#allocation5], 4294966528  ;;  %v107_v0 = vld [vmem:[#allocation4 + $0x8] sm:$0xff]  ;;  %v106_v1 = vld [vmem:[#allocation4] sm:$0xff]  ;;  %vm108_vm0 = vcmask 130048   ;;  %vm148_vm1 = vcmask 195584  }
  0x12   :  { %444 = vmatpush.msra.mxu2 %v107_v0  ;;  %v104_v2 = vld [vmem:[%s756_s1 + $0x8] sm:$0xff]  ;;  %132 = vmatpush.msra.mxu0 %v107_v0  ;;  %v103_v3 = vld [vmem:[%s756_s1] sm:$0xff]  ;;  %v105_v4 = vld [vmem:[%s756_s1 + $0x10] sm:$0xff]  ;;  %vm205_vm2 = vcmask 261120   ;;  %vm395_vm3 = vcmask 7168   ;;  %s776_s29 = sld [smem:[#allocation10_spill]] }
  0x13   :  { %v204_v5 = vld [vmem:[%s761_s6 + $0x18] sm:$0xff]  ;;  %v656_v9 = vld [vmem:[#allocation2] sm:$0xff]  ;;  %v658_v10 = vld [vmem:[#allocation2 + $0x8] sm:$0xff]  ;;  %vm416_vm4 = vcmask 15368  }
  0x14   :  { %445 = vmatpush.msra.mxu2 %v106_v1  ;;  %133 = vmatpush.msra.mxu0 %v106_v1  ;;  %v660_v11 = vld [vmem:[#allocation2 + $0x10] sm:$0xff]  ;;  %v202_v13 = vld [vmem:[%s761_s6 + $0x8] sm:$0xff]  ;;  %v201_v14 = vld [vmem:[%s761_s6] sm:$0xff] }
  0x15   :  { %427 = vmatmul.msk.f32.vlgmr.msra.gmra.mxu2 %vm108_vm0, %v104_v2  ;;  %426 = vmatmul.msk.f32.vlgmr.msra.gmra.mxu0 %vm108_vm0, %v103_v3  ;;  %v203_v12 = vld [vmem:[%s761_s6 + $0x10] sm:$0xff]  ;;  %v457_v15 = vld [vmem:[%s758_s3] ss:$0 sm:$0xff]  ;;  %v290_v37 = vld [vmem:[#allocation6 + $0x10] sm:$0xff] }
  0x16   :  { %227 = vmatpush.msrb.mxu2 %v204_v5  ;;  %v458_v18 = vld [vmem:[%s759_s4] ss:$0 sm:$0xff]  ;;  %v289_v38 = vld [vmem:[#allocation6 + $0x8] sm:$0xff]  ;;  %v288_v39 = vld [vmem:[#allocation6] sm:$0xff] }
  0x17   :  { %v459_v22 = vld [vmem:[%s760_s5] ss:$0 sm:$0xff] }
  0x18   :  { %228 = vmatpush.msrb.mxu2 %v203_v12  ;;  %v291_v36 = vld [vmem:[#allocation6 + $0x18] sm:$0xff] }
  0x19   :  { %v460_v40 = vld [vmem:[%s762_s7] ss:$0 sm:$0xff] }
  0x1a   :  { %229 = vmatpush.msrb.mxu2 %v202_v13  ;;  %v461_v43 = vld [vmem:[%s763_s8] ss:$0 sm:$0xff]  ;;  %v467_v13 = vld [vmem:[%s769_s14 + $0x1] ss:$0 sm:$0xff] }
  0x1b   :  { %v462_v45 = vld [vmem:[%s764_s9] ss:$0 sm:$0xff] }
  0x1c   :  { %230 = vmatpush.msrb.mxu2 %v201_v14  ;;  %v463_v61 = vld [vmem:[%s766_s11] ss:$0 sm:$0xff] }
  0x1d   :  { %428 = vmatmul.msk.f32.gmra.mxu2 %vm108_vm0, %v105_v4  ;;  %v464_v0 = vld [vmem:[%s767_s12] ss:$0 sm:$0xff] }
  0x1e   :  { %v465_v2 = vld [vmem:[%s768_s13] ss:$0 sm:$0xff] }
  0x1f   :  { %v466_v4 = vld [vmem:[%s769_s14] ss:$0 sm:$0xff] }
  0x92   :  { %v135_v8 = vpop.f32.mrf.mxu0 }
  0x98   :  { %v138_v6 = vpop.f32.mrf.mxu2 }
  0xa0   :  { %v141_v7 = vpop.f32.mrf.mxu2 }
  0xa1   :  { %171 = vmatpush.msrb.mxu0 %v141_v7  ;;  %446 = vmatpush.msra.mxu1 %v141_v7 }
  0xa2   :  { %447 = vmatpush.msra.mxu3 %v141_v7 }
  0xa3   :  { %172 = vmatpush.msrb.mxu0 %v138_v6  ;;  %448 = vmatpush.msra.mxu1 %v138_v6 }
  0xa4   :  { %449 = vmatpush.msra.mxu3 %v138_v6 }
  0xa5   :  { %173 = vmatpush.msrb.mxu0 %v135_v8  ;;  %450 = vmatpush.msra.mxu1 %v135_v8 }
  0xa6   :  { %451 = vmatpush.msra.mxu3 %v135_v8  ;;  %429 = vmatmul.msk.f32.vlgmr.msrb.gmra.mxu0 %vm148_vm1, %v656_v9 }
  0xa7   :  { %430 = vmatmul.msk.f32.vlgmr.msra.gmra.mxu1 %vm148_vm1, %v658_v10  ;;  %431 = vmatmul.msk.f32.vlgmr.msra.gmra.mxu3 %vm148_vm1, %v660_v11 }
  0xa8   :  { %313 = vmatpush.msra.mxu0 %v291_v36 }
  0xaa   :  { %314 = vmatpush.msra.mxu0 %v290_v37 }
  0xac   :  { %315 = vmatpush.msra.mxu0 %v289_v38 }
  0xae   :  { %316 = vmatpush.msra.mxu0 %v288_v39 }
 0x123   :  { %v175_v16 = vpop.f32.mrf.mxu0 }
 0x124   :  { %v176_v17 = vadd.f32 %v457_v15, %v175_v16  ;;  %v178_v19 = vpop.f32.mrf.mxu1 }
 0x125   :  { %v179_v20 = vadd.f32 %v457_v15, %v178_v19 }
 0x126   :  { %v184_v21 = vmax.f32 %v176_v17, 0.0 }
 0x127   :  { %v185_v24 = vmax.f32 %v179_v20, 0.0 }
 0x128   :  { %v191_v23 = vmul.f32 %v458_v18, %v184_v21 }
 0x129   :  { %v192_v27 = vmul.f32 %v458_v18, %v185_v24 }
 0x12a   :  { %v198_v25 = vadd.f32 %v459_v22, %v191_v23  ;;  %v181_v26 = vpop.f32.mrf.mxu3 }
 0x12b   :  { %v182_v28 = vadd.f32 %v457_v15, %v181_v26  ;;  %v199_v30 = vadd.f32 %v459_v22, %v192_v27 }
 0x12c   :  { %432 = vmatmul.msk.f32.vlgmr.msrb.gmra.mxu2 %vm205_vm2, %v198_v25 }
 0x12d   :  { %v186_v29 = vmax.f32 %v182_v28, 0.0 }
 0x12f   :  { %v193_v31 = vmul.f32 %v458_v18, %v186_v29  ;;  %v468_v29 = vld [vmem:[%s770_s15] ss:$0 sm:$0xff] }
 0x131   :  { %v200_v32 = vadd.f32 %v459_v22, %v193_v31 }
 0x134   :  { %433 = vmatmul.msk.f32.gmra.mxu2 %vm205_vm2, %v199_v30 }
 0x13c   :  { %434 = vmatmul.msk.f32.gmra.mxu2 %vm205_vm2, %v200_v32 }
 0x1af   :  { %v232_v33 = vpop.f32.mrf.mxu2 }
 0x1b7   :  { %v235_v34 = vpop.f32.mrf.mxu2 }
 0x1bf   :  { %v238_v35 = vpop.f32.mrf.mxu2 }
 0x1c0   :  { %258 = vmatpush.msrb.mxu3 %v238_v35 }
 0x1c2   :  { %259 = vmatpush.msrb.mxu3 %v235_v34 }
 0x1c4   :  { %260 = vmatpush.msrb.mxu3 %v232_v33 }
 0x1c5   :  { %435 = vmatmul.msk.f32.vlgmr.msrb.gmra.mxu3 %vm148_vm1, %v656_v9 }
 0x1cd   :  { %436 = vmatmul.msk.f32.gmra.mxu3 %vm148_vm1, %v658_v10 }
 0x1d5   :  { %437 = vmatmul.msk.f32.gmra.mxu3 %vm148_vm1, %v660_v11 }
 0x248   :  { %v262_v41 = vpop.f32.mrf.mxu3 }
 0x249   :  { %v263_v42 = vadd.f32 %v460_v40, %v262_v41 }
 0x24b   :  { %v271_v44 = vmax.f32 %v263_v42, 0.0 }
 0x24d   :  { %v278_v46 = vmul.f32 %v461_v43, %v271_v44 }
 0x24f   :  { %v285_v47 = vadd.f32 %v462_v45, %v278_v46 }
 0x250   :  { %v265_v48 = vpop.f32.mrf.mxu3 }
 0x251   :  { %v266_v49 = vadd.f32 %v460_v40, %v265_v48  ;;  %438 = vmatmul.msk.f32.vlgmr.msra.gmra.mxu0 %vm205_vm2, %v285_v47 }
 0x253   :  { %v272_v50 = vmax.f32 %v266_v49, 0.0 }
 0x255   :  { %v279_v51 = vmul.f32 %v461_v43, %v272_v50 }
 0x257   :  { %v286_v52 = vadd.f32 %v462_v45, %v279_v51 }
 0x258   :  { %v268_v53 = vpop.f32.mrf.mxu3 }
 0x259   :  { %v269_v54 = vadd.f32 %v460_v40, %v268_v53  ;;  %439 = vmatmul.msk.f32.gmra.mxu0 %vm205_vm2, %v286_v52 }
 0x25b   :  { %v273_v55 = vmax.f32 %v269_v54, 0.0 }
 0x25d   :  { %v280_v56 = vmul.f32 %v461_v43, %v273_v55 }
 0x25f   :  { %v287_v57 = vadd.f32 %v462_v45, %v280_v56 }
 0x261   :  { %440 = vmatmul.msk.f32.gmra.mxu0 %vm205_vm2, %v287_v57 }
 0x2ce   :  { %v318_v58 = vpop.f32.mrf.mxu0 }
 0x2d6   :  { %v321_v59 = vpop.f32.mrf.mxu0 }
 0x2de   :  { %v324_v60 = vpop.f32.mrf.mxu0 }
 0x2df   :  { %344 = vmatpush.msrb.mxu1 %v324_v60 }
 0x2e1   :  { %345 = vmatpush.msrb.mxu1 %v321_v59 }
 0x2e3   :  { %346 = vmatpush.msrb.mxu1 %v318_v58 }
 0x2e4   :  { %441 = vmatmul.msk.f32.vlgmr.msrb.gmra.mxu1 %vm148_vm1, %v656_v9 }
 0x2ec   :  { %442 = vmatmul.msk.f32.gmra.mxu1 %vm148_vm1, %v658_v10 }
 0x2f4   :  { %443 = vmatmul.msk.f32.gmra.mxu1 %vm148_vm1, %v660_v11 }
 0x361   :  { %v348_v62 = vpop.f32.mrf.mxu1 }
 0x362   :  { %v349_v63 = vadd.f32 %v463_v61, %v348_v62 }
 0x364   :  { %v357_v1 = vmax.f32 %v349_v63, 0.0 }
 0x366   :  { %v364_v3 = vmul.f32 %v464_v0, %v357_v1 }
 0x368   :  { %v371_v5 = vadd.f32 %v465_v2, %v364_v3 }
 0x369   :  { %v351_v6 = vpop.f32.mrf.mxu1 }
 0x36a   :  { %v352_v7 = vadd.f32 %v463_v61, %v351_v6  ;;  %v377_v8 = vmul.f32 %v466_v4, %v371_v5  ;;  %v401_v27 = vmul.f32 %v467_v13, %v371_v5 }
 0x36c   :  { %v358_v9 = vmax.f32 %v352_v7, 0.0  ;;  %v380_v10 = vsel %vm205_vm2, %v377_v8, 0.0  ;;  %v404_v28 = vsel %vm205_vm2, %v401_v27, 0.0 }
 0x36d   :  { %381 = vadd.xlane.f32.xlu0 %v380_v10 }
 0x36e   :  { %v365_v11 = vmul.f32 %v464_v0, %v358_v9 }
 0x370   :  { %v372_v12 = vadd.f32 %v465_v2, %v365_v11 }
 0x371   :  { %v354_v14 = vpop.f32.mrf.mxu1 }
 0x372   :  { %v355_v15 = vadd.f32 %v463_v61, %v354_v14  ;;  %v378_v16 = vmul.f32 %v466_v4, %v372_v12  ;;  %v402_v17 = vmul.f32 %v467_v13, %v372_v12 }
 0x374   :  { %v359_v18 = vmax.f32 %v355_v15, 0.0  ;;  %v383_v19 = vsel %vm205_vm2, %v378_v16, 0.0  ;;  %v407_v20 = vsel %vm205_vm2, %v402_v17, 0.0 }
 0x375   :  { %384 = vadd.xlane.f32.xlu0 %v383_v19  ;;  %408 = vadd.xlane.f32.xlu2 %v407_v20 }
 0x376   :  { %v366_v21 = vmul.f32 %v464_v0, %v359_v18 }
 0x378   :  { %v373_v22 = vadd.f32 %v465_v2, %v366_v21 }
 0x37a   :  { %v379_v23 = vmul.f32 %v466_v4, %v373_v22  ;;  %v403_v24 = vmul.f32 %v467_v13, %v373_v22 }
 0x37c   :  { %v386_v25 = vsel %vm205_vm2, %v379_v23, 0.0  ;;  %v410_v26 = vsel %vm205_vm2, %v403_v24, 0.0 }
 0x37d   :  { %387 = vadd.xlane.f32.xlu1 %v386_v25  ;;  %411 = vadd.xlane.f32.xlu2 %v410_v26 }
 0x385   :  { %405 = vadd.xlane.f32.xlu1 %v404_v28 }
 0x3e0   :  { %v382_v30 = vpop.xlane.xlu0 %381 }
 0x3e1   :  { %v392_v31 = vadd.f32 %v468_v29, %v382_v30 }
 0x3e3   :  { %396 = vst.msk [vmem:[%s776_s29] sm:$0xff] %vm395_vm3, %v392_v31 }
 0x3e8   :  { %v385_v32 = vpop.xlane.xlu0 %384  ;;  %v409_v33 = vpop.xlane.xlu2 %408 }
 0x3e9   :  { %v393_v34 = vadd.f32 %v468_v29, %v385_v32  ;;  %v414_v35 = vadd.f32 %v468_v29, %v409_v33 }
 0x3eb   :  { %397 = vst.msk [vmem:[%s776_s29 + $0x8] sm:$0xff] %vm395_vm3, %v393_v34 }
 0x3ec   :  { %418 = vst.msk [vmem:[%s776_s29 + $0x8] sm:$0xff] %vm416_vm4, %v414_v35 }
 0x3f0   :  { %v388_v36 = vpop.xlane.xlu1 %387  ;;  %v412_v37 = vpop.xlane.xlu2 %411 }
 0x3f1   :  { %v394_v38 = vadd.f32 %v468_v29, %v388_v36  ;;  %v415_v39 = vadd.f32 %v468_v29, %v412_v37 }
 0x3f3   :  { %398 = vst.msk [vmem:[%s776_s29 + $0x10] sm:$0xff] %vm395_vm3, %v394_v38 }
 0x3f4   :  { %419 = vst.msk [vmem:[%s776_s29 + $0x10] sm:$0xff] %vm416_vm4, %v415_v39 }
 0x3f8   :  { %v406_v40 = vpop.xlane.xlu1 %405 }
 0x3f9   :  { %v413_v41 = vadd.f32 %v468_v29, %v406_v40 }
 0x3fb   :  { %417 = vst.msk [vmem:[%s776_s29] sm:$0xff] %vm416_vm4, %v413_v41 }
 0x3fc   :  { %424 = vsyncpa [#allocation3], 1 }
 0x3fd   :  { %425 = vsyncpa [#allocation5], 1 }

</bundles_post_ra>
